<compile_context>
chip_gen: v5e
topology: v5e:2x2
jax: 0.10.0
libtpu: 0.0.40
codegen_flags: <defaults>
</compile_context>

<pallas_src>
from functools import partial

import jax
import jax.numpy as jnp
from jax import lax
from jax.experimental import pallas as pl
from jax.experimental.pallas import tpu as pltpu


def gatdot_rel_kernel(qb_ref, k_ref, v_ref, attn_ref, out_ref, *,
                      d, approx, precision):
    qb = qb_ref[...]                       # (TB, 1, D+N) f32  ([qk | bias])
    qk = qb[:, :, :d]                      # (TB, 1, D)
    bias = qb[:, :, d:]                    # (TB, 1, N)  mask already folded in
    k = k_ref[...]                         # (TB, N, D)  input dtype (bf16/f32)
    v = v_ref[...]                         # (TB, N, D)

    # scores: alpha[b,0,n] = sum_d qk[b,0,d] * K[b,n,d]  (batched MXU matmul,
    # f32 accumulation; the VPU/XLU stay free for the softmax).
    alpha = lax.dot_general(
        qk.astype(k.dtype), k,
        dimension_numbers=(((2,), (2,)), ((0,), (0,))),
        preferred_element_type=jnp.float32,
        precision=precision) + bias                      # (TB, 1, N)

    # row-wise softmax over the context axis (f32 throughout)
    m = jnp.max(alpha, axis=-1, keepdims=True)
    e = jnp.exp(alpha - m)
    denom = jnp.sum(e, axis=-1, keepdims=True)
    if approx:
        attn = e * pl.reciprocal(denom, approx=True)     # EUP slot, ~free
    else:
        attn = e / denom                                 # exact path for tests
    attn_ref[...] = attn.astype(attn_ref.dtype)

    # out[b,0,:] = sum_n attn[b,0,n] * V[b,n,:]  (batched MXU matmul; cast the
    # weights to the V dtype so bf16 streams run the MXU at full rate).
    out = lax.dot_general(
        attn.astype(v.dtype), v,
        dimension_numbers=(((2,), (1,)), ((0,), (0,))),
        preferred_element_type=jnp.float32,
        precision=precision)                             # (TB, 1, D)
    out_ref[...] = out.astype(out_ref.dtype)


def _tile_bytes(sublanes, lanes, itemsize):
    """VMEM bytes of one (sublanes, lanes) plane after (8,128) tile padding
    (sub-32-bit dtypes pack along sublanes)."""
    sub = 8 * max(1, 4 // itemsize)
    return (-(-sublanes // sub) * sub) * (-(-lanes // 128) * 128) * itemsize


def _vmem_capacity_bytes():
    try:
        return int(pltpu.get_tpu_info().vmem_capacity_bytes)
    except Exception:
        return 64 << 20                   # conservative (v7x-sized) fallback


def _choose_tb(B, kv_row_bytes, vmem_cap, *, min_steps=8, target_bytes=2 << 20):
    """Batch rows per grid step.

    Sized by bytes (amortize the ~0.35us per-step overhead with >= ~2 MiB of
    K+V per block), capped so the double-buffered K+V blocks fit a
    generation-aware VMEM budget, and capped so there are at least
    `min_steps` grid steps (megacore sharding on v7x + pipeline warm-up)."""
    kv_row_bytes = max(int(kv_row_bytes), 1)
    # v7x (64 MiB VMEM/TC) -> ~21 MiB double-buffered K+V; v5e/v6e (128 MiB) -> ~64 MiB
    kv_budget = vmem_cap // 3 if vmem_cap <= (64 << 20) else vmem_cap // 2
    kv_budget = max(kv_budget, 4 << 20)
    tb = max(1, target_bytes // kv_row_bytes)                 # big-enough DMAs
    tb = min(tb, max(1, kv_budget // (2 * kv_row_bytes)))     # double-buffered budget
    tb = min(tb, max(1, -(-B // min_steps)))                  # keep >= min_steps steps
    if tb >= 8:
        tb -= tb % 8                                          # sublane-friendly
    return max(int(tb), 1)


def gatdot_rel(Q, K, V, adj, s_mask, params, *, tb=None, approx_recip=True,
               matmul_precision=None):
    """Q:(B,D) K,V:(B,N,D) adj:(B,N) s_mask:(B,N) int
    -> (attn:(B,1,N) f32, attn_sum:(B,D) f32), matching GatDot_rel.forward.
    Pass matmul_precision=jax.lax.Precision.HIGHEST for full-f32 MXU passes."""
    B, N, D = K.shape
    f32 = jnp.float32

    w1, b1 = params["w1"].astype(f32), params["b1"].astype(f32)
    w2, b2 = params["w2"].astype(f32), params["b2"].astype(f32)
    w3, b3 = params["w3"].astype(f32), params["b3"].astype(f32)
    emb = params["emb"].astype(f32)

    # ---- hoisted Q-side / relation math (a few batched XLA matmuls) ----
    Qp = Q.astype(f32) @ w1.T + b1                 # (B, D)   linear1(Q)
    qk = Qp @ w2                                   # (B, D)   Kp.Qp == K.qk + c
    c = Qp @ b2                                    # (B,)     b2 . Qp
    w3e = emb @ w3.reshape(D)                      # (2,)     linear3 of each emb row
    y = w3e[s_mask] + b3[0]                        # (B, N)   exact 2-row emb lookup
    # fold mask_logic into the bias:  alpha - (1 - adj) * 1e30
    bias = y + c[:, None] - (1.0 - adj.astype(f32).reshape(B, N)) * 1e30

    # single small per-row operand [qk | bias] -> one DMA per grid step
    qb = jnp.concatenate([qk[:, None, :], bias[:, None, :]], axis=-1)  # (B,1,D+N)

    # ---- tiling (generation-aware) ----
    itemK = jnp.dtype(K.dtype).itemsize
    itemV = jnp.dtype(V.dtype).itemsize
    kv_row_bytes = _tile_bytes(N, D, itemK) + _tile_bytes(N, D, itemV)
    vmem_cap = _vmem_capacity_bytes()
    if tb is None:
        tb = _choose_tb(B, kv_row_bytes, vmem_cap)
    grid_b = -(-B // tb)                           # cdiv
    B_pad = grid_b * tb

    Kc, Vc = K, V                                  # stream in input dtype (bf16 ok)
    if B_pad != B:
        pad = B_pad - B
        qb = jnp.pad(qb, ((0, pad), (0, 0), (0, 0)))
        Kc = jnp.pad(Kc, ((0, pad), (0, 0), (0, 0)))
        Vc = jnp.pad(Vc, ((0, pad), (0, 0), (0, 0)))

    # ---- explicit VMEM budget (padded block bytes + in-kernel temporaries) ----
    kv_block = tb * kv_row_bytes
    small_in = tb * _tile_bytes(1, D + N, 4)
    small_out = tb * (_tile_bytes(1, N, 4) + _tile_bytes(1, D, 4))
    est = 2 * (kv_block + small_in + small_out)            # double-buffered pipeline
    est += kv_block + 8 * small_out                        # in-kernel temporaries headroom
    vmem_limit = int(min(max(2 * est, 16 << 20), (vmem_cap * 3) // 4))

    out_shapes = (jax.ShapeDtypeStruct((B_pad, 1, N), f32),
                  jax.ShapeDtypeStruct((B_pad, 1, D), f32))

    in_specs = [
        pl.BlockSpec((tb, 1, D + N), lambda b: (b, 0, 0)),   # [qk | bias]
        pl.BlockSpec((tb, N, D), lambda b: (b, 0, 0)),       # K
        pl.BlockSpec((tb, N, D), lambda b: (b, 0, 0)),       # V
    ]
    # NOTE: for tiny N/D (<128) the outputs lower to masked stores; real model
    # sizes (D multiple of 128) get unmasked lane-dense stores.  On v6e a
    # deeper pipeline (pipeline_mode=pl.Buffered(3) on K/V) is a further tweak.
    out_specs = (pl.BlockSpec((tb, 1, N), lambda b: (b, 0, 0)),
                 pl.BlockSpec((tb, 1, D), lambda b: (b, 0, 0)))

    attn, attn_sum = pl.pallas_call(
        partial(gatdot_rel_kernel, d=D, approx=approx_recip,
                precision=matmul_precision),
        out_shape=out_shapes,
        grid=(grid_b,),
        in_specs=in_specs,
        out_specs=out_specs,
        compiler_params=pltpu.CompilerParams(
            dimension_semantics=("parallel",),
            vmem_limit_bytes=vmem_limit),
    )(qb, Kc, Vc)

    return attn[:B], attn_sum[:B, 0, :]


def gatdot_rel_reference(Q, K, V, adj, s_mask, p):
    """Pure-JAX reference matching the PyTorch forward."""
    rel = p["emb"][s_mask]                                   # (B, N, D)
    Qp = Q @ p["w1"].T + p["b1"]                             # (B, D)
    Kp = K @ p["w2"].T + p["b2"]                             # (B, N, D)
    y = rel @ p["w3"].T + p["b3"]                            # (B, N, 1)
    alpha = jnp.einsum("bnd,bd->bn", Kp, Qp)[:, None, :] + jnp.transpose(y, (0, 2, 1))
    alpha = alpha - (1.0 - adj[:, None, :].astype(jnp.float32)) * 1e30
    attn = jax.nn.softmax(alpha, axis=2)                     # (B, 1, N)
    attn_sum = jnp.einsum("bon,bnd->bod", attn, V)[:, 0, :]  # (B, D)
    return attn, attn_sum


if __name__ == "__main__":
    B, N, D = 2, 8, 32
    key = jax.random.PRNGKey(0)
    ks = jax.random.split(key, 12)

    # Deterministic synthetic parameters (shapes from GatDot_rel.__init__)
    scale = 1.0 / jnp.sqrt(D)
    params = {
        "w1": jax.random.uniform(ks[0], (D, D), jnp.float32, -scale, scale),
        "b1": jax.random.uniform(ks[1], (D,), jnp.float32, -scale, scale),
        "w2": jax.random.uniform(ks[2], (D, D), jnp.float32, -scale, scale),
        "b2": jax.random.uniform(ks[3], (D,), jnp.float32, -scale, scale),
        "w3": jax.random.uniform(ks[4], (1, D), jnp.float32, -scale, scale),
        "b3": jax.random.uniform(ks[5], (1,), jnp.float32, -scale, scale),
        "emb": jax.random.normal(ks[6], (2, D), jnp.float32),
    }

    # Inputs
    Q = jax.random.normal(ks[7], (B, D), jnp.float32)
    K = jax.random.normal(ks[8], (B, N, D), jnp.float32)
    V = jax.random.normal(ks[9], (B, N, D), jnp.float32)
    adj = jax.random.randint(ks[10], (B, N), 0, 2).astype(jnp.float32)
    adj = adj.at[:, 0].set(1.0)   # ensure at least one unmasked neighbor
    s_mask = jax.random.randint(ks[11], (B, N), 0, 2)

    ref_w, ref_sum = gatdot_rel_reference(Q, K, V, adj, s_mask, params)

    # 1) f32 streaming + exact softmax division.
    attn_w, attn_sum = gatdot_rel(Q, K, V, adj, s_mask, params, approx_recip=False)
    jax.block_until_ready((attn_w, attn_sum))
    assert attn_w.shape == (B, 1, N) and attn_sum.shape == (B, D)
    assert jnp.allclose(attn_w, ref_w, rtol=5e-2, atol=5e-2)
    assert jnp.allclose(attn_sum, ref_sum, rtol=5e-2, atol=5e-2)

    # 2) Performance configuration: bf16 K/V streaming + approx EUP reciprocal.
    attn_w16, attn_sum16 = gatdot_rel(
        Q, K.astype(jnp.bfloat16), V.astype(jnp.bfloat16), adj, s_mask, params)
    jax.block_until_ready((attn_w16, attn_sum16))
    assert jnp.allclose(attn_w16, ref_w, rtol=5e-2, atol=5e-2)
    assert jnp.allclose(attn_sum16, ref_sum, rtol=5e-2, atol=5e-2)

    print("KERNEL_OK")
</pallas_src>

<mosaic_0001>
module attributes {stable_mosaic.version = 11 : i64} {
  func.func @gatdot_rel_kernel(%arg0: i32, %arg1: memref<1x1x40xf32, #tpu.memory_space<vmem>>, %arg2: memref<1x8x32xf32, #tpu.memory_space<vmem>>, %arg3: memref<1x8x32xf32, #tpu.memory_space<vmem>>, %arg4: memref<1x1x8xf32, #tpu.memory_space<vmem>>, %arg5: memref<1x1x32xf32, #tpu.memory_space<vmem>>) attributes {dimension_semantics = [#tpu.dimension_semantics<parallel>], iteration_bounds = array<i64: 2>, scalar_prefetch = 0 : i64, scratch_operands = 0 : i64, tpu.core_type = #tpu.core_type<tc>, window_params = [{transform_indices = @transform_0, window_bounds = array<i64: 1, 1, 40>}, {transform_indices = @transform_1, window_bounds = array<i64: 1, 8, 32>}, {transform_indices = @transform_2, window_bounds = array<i64: 1, 8, 32>}, {transform_indices = @transform_3, window_bounds = array<i64: 1, 1, 8>}, {transform_indices = @transform_4, window_bounds = array<i64: 1, 1, 32>}]} {
    %c0 = arith.constant 0 : index
    %c0_0 = arith.constant 0 : index
    %c0_1 = arith.constant 0 : index
    %0 = vector.load %arg1[%c0, %c0_0, %c0_1] : memref<1x1x40xf32, #tpu.memory_space<vmem>>, vector<1x1x40xf32>
    %1 = vector.extract_strided_slice %0 {offsets = [0, 0, 0], sizes = [1, 1, 32], strides = [1, 1, 1]} : vector<1x1x40xf32> to vector<1x1x32xf32>
    %2 = vector.extract_strided_slice %0 {offsets = [0, 0, 32], sizes = [1, 1, 8], strides = [1, 1, 1]} : vector<1x1x40xf32> to vector<1x1x8xf32>
    %c0_2 = arith.constant 0 : index
    %c0_3 = arith.constant 0 : index
    %c0_4 = arith.constant 0 : index
    %3 = vector.load %arg2[%c0_2, %c0_3, %c0_4] : memref<1x8x32xf32, #tpu.memory_space<vmem>>, vector<1x8x32xf32>
    %c0_5 = arith.constant 0 : index
    %c0_6 = arith.constant 0 : index
    %c0_7 = arith.constant 0 : index
    %4 = vector.load %arg3[%c0_5, %c0_6, %c0_7] : memref<1x8x32xf32, #tpu.memory_space<vmem>>, vector<1x8x32xf32>
    %cst = arith.constant dense<0.000000e+00> : vector<1x1x8xf32>
    %5 = tpu.matmul %1, %3, %cst {dimension_numbers = #tpu.dot_dimension_numbers<[2], [2], [1], [1], [0, 0, 0, 1, 1, 1], [0], [0]>} : vector<1x1x32xf32>, vector<1x8x32xf32>, vector<1x1x8xf32> -> vector<1x1x8xf32>
    %6 = arith.addf %5, %2 : vector<1x1x8xf32>
    %cst_8 = arith.constant dense<0xFF800000> : vector<1x1xf32>
    %7 = vector.multi_reduction <maximumf>, %6, %cst_8 [2] : vector<1x1x8xf32> to vector<1x1xf32>
    %8 = vector.shape_cast %7 : vector<1x1xf32> to vector<1x1x1xf32>
    %9 = vector.broadcast %8 : vector<1x1x1xf32> to vector<1x1x8xf32>
    %10 = arith.subf %6, %9 : vector<1x1x8xf32>
    %11 = math.exp %10 : vector<1x1x8xf32>
    %cst_9 = arith.constant dense<0.000000e+00> : vector<1x1xf32>
    %12 = vector.multi_reduction <add>, %11, %cst_9 [2] : vector<1x1x8xf32> to vector<1x1xf32>
    %13 = vector.shape_cast %12 : vector<1x1xf32> to vector<1x1x1xf32>
    %14 = vector.broadcast %13 : vector<1x1x1xf32> to vector<1x1x8xf32>
    %15 = arith.divf %11, %14 : vector<1x1x8xf32>
    %c0_10 = arith.constant 0 : index
    %c0_11 = arith.constant 0 : index
    %c0_12 = arith.constant 0 : index
    %16 = vector.load %arg4[%c0_10, %c0_11, %c0_12] : memref<1x1x8xf32, #tpu.memory_space<vmem>>, vector<1x1x8xf32>
    tpu.vector_store %arg4[%c0_10, %c0_11, %c0_12], %15 {strides = array<i32>} : memref<1x1x8xf32, #tpu.memory_space<vmem>>, vector<1x1x8xf32>,
    %cst_13 = arith.constant dense<0.000000e+00> : vector<1x1x32xf32>
    %17 = tpu.matmul %15, %4, %cst_13 {dimension_numbers = #tpu.dot_dimension_numbers<[2], [1], [1], [2], [0, 0, 0, 1, 1, 2], [0], [0]>} : vector<1x1x8xf32>, vector<1x8x32xf32>, vector<1x1x32xf32> -> vector<1x1x32xf32>
    %c0_14 = arith.constant 0 : index
    %c0_15 = arith.constant 0 : index
    %c0_16 = arith.constant 0 : index
    %18 = vector.load %arg5[%c0_14, %c0_15, %c0_16] : memref<1x1x32xf32, #tpu.memory_space<vmem>>, vector<1x1x32xf32>
    tpu.vector_store %arg5[%c0_14, %c0_15, %c0_16], %17 {strides = array<i32>} : memref<1x1x32xf32, #tpu.memory_space<vmem>>, vector<1x1x32xf32>,
    return
  }
  func.func @transform_0(%arg0: i32) -> (i32, i32, i32) {
    %c0_i32 = arith.constant 0 : i32
    %c0_i32_0 = arith.constant 0 : i32
    %c0_i32_1 = arith.constant 0 : i32
    return %arg0, %c0_i32, %c0_i32_0 : i32, i32, i32
  }
  func.func @transform_1(%arg0: i32) -> (i32, i32, i32) {
    %c0_i32 = arith.constant 0 : i32
    %c0_i32_0 = arith.constant 0 : i32
    %c0_i32_1 = arith.constant 0 : i32
    return %arg0, %c0_i32, %c0_i32_0 : i32, i32, i32
  }
  func.func @transform_2(%arg0: i32) -> (i32, i32, i32) {
    %c0_i32 = arith.constant 0 : i32
    %c0_i32_0 = arith.constant 0 : i32
    %c0_i32_1 = arith.constant 0 : i32
    return %arg0, %c0_i32, %c0_i32_0 : i32, i32, i32
  }
  func.func @transform_3(%arg0: i32) -> (i32, i32, i32) {
    %c0_i32 = arith.constant 0 : i32
    %c0_i32_0 = arith.constant 0 : i32
    %c0_i32_1 = arith.constant 0 : i32
    return %arg0, %c0_i32, %c0_i32_0 : i32, i32, i32
  }
  func.func @transform_4(%arg0: i32) -> (i32, i32, i32) {
    %c0_i32 = arith.constant 0 : i32
    %c0_i32_0 = arith.constant 0 : i32
    %c0_i32_1 = arith.constant 0 : i32
    return %arg0, %c0_i32, %c0_i32_0 : i32, i32, i32
  }
}

</mosaic_0001>

<bundles_post_ra>
// kernel: tpu_custom_call.1
= control target key start
LH: loop header
LB: loop body
LE: loop exit
PB: predicated region body
PF: predicated region fallthrough
CT: control target
= control target key end

     0   :  { %s1041_s0 = inlined_call_operand.hbm [shape: f32[2,1,40], index: 0, kind: input, shape index: {}]   ;;  %s1042_s1 = inlined_call_operand.hbm [shape: f32[2,8,32], index: 1, kind: input, shape index: {}]   ;;  %s1043_s2 = inlined_call_operand.hbm [shape: f32[2,8,32], index: 2, kind: input, shape index: {}]   ;;  %s1044_s3 = inlined_call_operand.hbm [shape: f32[2,1,8], index: 3, kind: output, shape index: {0}]   ;;  %s1045_s4 = inlined_call_operand.hbm [shape: f32[2,1,32], index: 4, kind: output, shape index: {1}]  }
   0x1   :  { %1047 = sst [smem:[#allocation16_spill]] %s1042_s1 }
   0x2   :  { %10 = vsyncpa [#allocation3], 0 }
   0x3   :  { %12 = vsyncpa [#allocation3 + $0x1], 0 }
   0x4   :  { %13 = vsyncpa [#allocation6], 0 }
   0x5   :  { %15 = vsyncpa [#allocation6 + $0x1], 0 }
   0x6   :  { %16 = vsyncpa [#allocation4], 0 }
   0x7   :  { %18 = vsyncpa [#allocation4 + $0x1], 0 }
   0x8   :  { %19 = vsyncpa [#allocation10], 0 }
   0x9   :  { %21 = vsyncpa [#allocation10 + $0x1], 0  ;;  %s846_s15 = smov 0   ;;  %s848_s16 = smov 0  }
   0xa   :  { %s850_s17 = smov 0   ;;  %s852_s18 = smov 0  }
   0xb LB: > { %s867_s19 = sadd.s32 4294967295, %s818_s18   ;;  %s544_s20 = sadd.s32 4294967294, %s818_s18   ;;  %s818_s18 = sphi %s852_s18, %s1060_s18   ;;  %s814_s17 = sphi %s850_s17, %s1059_s17   ;;  %s810_s16 = sphi %s848_s16, %s1058_s16   ;;  %s806_s15 = sphi %s846_s15, %s1057_s15  }
   0xc   : > { %s871_s21 = sadd.s32 1, %s818_s18   ;;  %s34_s22 = sadd.s32 1, %s814_s17 }
   0xd   : > { %s31_s23 = ssub.s32 %s818_s18, %s871_s21  ;;  %p41_p0 = scmp.ne.s32.totalorder %s814_s17, %s810_s16 }
   0xe   : > { %p32_p1 = scmp.eq.s32.totalorder %s31_s23, 0  ;;  %p42_p2 = scmp.eq.s32.totalorder %s818_s18, 0 }
   0xf   : > { %p47_p3 = scmp.ne.s32.totalorder %s810_s16, %s806_s15  ;;  %p48_p4 = scmp.eq.s32.totalorder %s867_s19, 0 }
  0x10   : > { %s883_s24 = scalar_select %p32_p1, %s814_s17, %s34_s22  }
  0x11   : > { %p43_p5 = por %p42_p2, %p41_p0  ;;  %p885_p6 = por %p48_p4, %p47_p3 }
  0x12   : > { %1048 = sst [smem:[#allocation15_spill]] %s883_s24  ;;  %p123_p7 = scmp.eq.s32.totalorder %s867_s19, 1 }
  0x13   : > { %p129_p8 = scmp.eq.s32.totalorder %s544_s20, 1  ;;  %p546_p9 = scmp.ge.s32.totalorder %s818_s18, 2 }
  0x14   : > { %p586_p10 = scmp.lt.s32.totalorder %s818_s18, 2  ;;  %p892_p11 = por %p123_p7, %p41_p0 }
  0x15   : > { %p896_p12 = por %p129_p8, %p47_p3  ;;  %s901_s28 = sand.u32 1, %s814_s17  }
  0x16   : > { %p903_p13 = pnand %p586_p10, %p43_p5  ;;  %s192_s30 = sand.u32 1, %s818_s18  }
  0x17   : > { %s1046_s5 = sshll.u32 %s901_s28, 3  ;;  %s548_s6 = sshll.u32 %s818_s18, 3 }
  0x18   : > { %s1053_s1 = sld [smem:[#allocation16_spill]]  ;;  %s196_s10 = scalar_lea.vmem [#allocation5], %s1046_s5 }
  0x19   : > { %s204_s11 = sshll.u32 %s196_s10, 4  ;;  %s915_s13 = scalar_lea.sflag [#allocation6], %s192_s30  ;;  %s205_s11 = int_to_ptr.vmem [resolvable:$true] %s204_s11 }
  0x1a   : > { %p630_p1 = pneg %p903_p13 }
  0x1e   : > { %s200_s9 = scalar_lea.hbm %s1053_s1, %s548_s6  ;;  %s633_s7 = scalar_lea.hbm %s1053_s1, 16 }
  0x1f   : > { %s202_s12 = sshll.u32 %s200_s9, 4  ;;  %s203_s12 = int_to_ptr.hbm [resolvable:$true] %s202_s12 }
  0x20   : > { %s626_s14 = sshra.s32 %s203_s12, 4  ;;  %s627_s14 = int_to_ptr.hbm [resolvable:$true] %s626_s14 }
  0x21   : > { %s628_s20 = scalar_lea.hbm %s627_s14, 8  ;;  %p634_p4 = scmp.lt.s32.totalorder %s627_s14, %s1053_s1 }
  0x22   : > { %p629_p0 = scmp.ne.s32.totalorder %s627_s14, %s628_s20  ;;  %p635_p5 = scmp.lt.s32.totalorder %s633_s7, %s628_s20 }
  0x24   : > { %p631_p2 = pnand %p630_p1, %p629_p0  ;;  %p636_p7 = por %p635_p5, %p634_p4 }
  0x26   : > { %p632_p3 = pneg %p631_p2 }
  0x28   : > { %p637_p8 = pnand %p636_p7, %p632_p3 }
  0x2a   : > { %640 = shalt.err (!%p637_p8)
}
  0x2b   : > { %575 = dma.hbm_to_vmem [thread:$0]  (!%p903_p13), %s203_s12, 128, %s205_s11, %s915_s13  }
  0x2c   : > { %s219_s22 = scalar_lea.hbm %s1043_s2, %s548_s6  ;;  %p551_p10 = scmp.ge.s32.totalorder %s818_s18, 1 }
  0x2d   : > { %p228_p0 = scmp.lt.s32.totalorder %s818_s18, 3  ;;  %s181_s23 = scalar_lea.hbm %s1041_s0, %s818_s18 }
  0x2e   : > { %s183_s8 = sshll.u32 %s181_s23, 4  ;;  %s178_s9 = scalar_lea.vmem [#allocation2], %s901_s28  ;;  %s184_s8 = int_to_ptr.hbm [resolvable:$true] %s183_s8 }
  0x2f   : > { %p940_p2 = pnand %p551_p10, %p228_p0  ;;  %s185_s5 = sshll.u32 %s178_s9, 4  ;;  %s186_s5 = int_to_ptr.vmem [resolvable:$true] %s185_s5 }
  0x30   : > { %s221_s11 = sshll.u32 %s219_s22, 4  ;;  %s176_s12 = scalar_lea.sflag [#allocation3], %s901_s28  ;;  %s222_s11 = int_to_ptr.hbm [resolvable:$true] %s221_s11 }
  0x31   : > { %s656_s30 = sshra.s32 %s184_s8, 4  ;;  %s663_s20 = scalar_lea.hbm %s1041_s0, 2  ;;  %s657_s30 = int_to_ptr.hbm [resolvable:$true] %s656_s30 }
  0x32   : > { %s658_s6 = scalar_lea.hbm %s657_s30, 1  ;;  %p664_p7 = scmp.lt.s32.totalorder %s657_s30, %s1041_s0 }
  0x33   : > { %p659_p3 = scmp.ne.s32.totalorder %s657_s30, %s658_s6  ;;  %p665_p8 = scmp.lt.s32.totalorder %s663_s20, %s658_s6 }
  0x35   : > { %p661_p4 = pnand %p659_p3, %p630_p1  ;;  %p666_p10 = por %p665_p8, %p664_p7 }
  0x37   : > { %p662_p5 = pneg %p661_p4 }
  0x39   : > { %p667_p0 = pnand %p666_p10, %p662_p5 }
  0x3b   : > { %670 = shalt.err (!%p667_p0)
}
  0x3c   : > { %572 = dma.hbm_to_vmem [thread:$0]  (!%p903_p13), %s184_s8, 16, %s186_s5, %s176_s12  }
  0x3d   : > { %s1055_s22 = sshll.u32 %s901_s28, 3  ;;  %s686_s10 = sshra.s32 %s222_s11, 4  ;;  %s687_s10 = int_to_ptr.hbm [resolvable:$true] %s686_s10 }
  0x3e   : > { %s215_s9 = scalar_lea.vmem [#allocation7], %s1055_s22  ;;  %s688_s14 = scalar_lea.hbm %s687_s10, 8 }
  0x3f   : > { %s223_s24 = sshll.u32 %s215_s9, 4  ;;  %p689_p3 = scmp.ne.s32.totalorder %s687_s10, %s688_s14  ;;  %s224_s24 = int_to_ptr.vmem [resolvable:$true] %s223_s24 }
  0x40   : > { %s693_s6 = scalar_lea.hbm %s1043_s2, 16  ;;  %p694_p5 = scmp.lt.s32.totalorder %s687_s10, %s1043_s2 }
  0x41   : > { %p691_p4 = pnand %p689_p3, %p630_p1  ;;  %p695_p8 = scmp.lt.s32.totalorder %s693_s6, %s688_s14 }
  0x43   : > { %p692_p7 = pneg %p691_p4  ;;  %p696_p10 = por %p695_p8, %p694_p5 }
  0x45   : > { %p697_p0 = pnand %p696_p10, %p692_p7 }
  0x47   : > { %700 = shalt.err (!%p697_p0)
}
  0x48   : > { %578 = dma.hbm_to_vmem [thread:$0]  (!%p903_p13), %s222_s11, 128, %s224_s24, %s915_s13  }
  0x49   : > { %232 = sbr.rel (%p940_p2) target bundleno = 607 (0x25f), region = 32  ;;  %s974_s28 = sand.u32 (!%p940_p2), 1, %s810_s16  }
  0x4a   : > { %s235_s5 = scalar_lea.sflag (!%p940_p2), [#allocation3], %s974_s28  ;;  %s237_s8 = scalar_lea.vmem (!%p940_p2), [#allocation2], %s974_s28 }
  0x4e   : > { %789 = dma.done.wait (%p885_p6), %s235_s5, 16  }
  0x4f   : > { %791 = vsyncadd (%p885_p6), %s235_s5, 4294967280  ;;  %s243_s24 = sand.u32 1, %s867_s19   ;;  %s552_s29 = sshll.u32 %s974_s28, 3 }
  0x50   : > { %s244_s13 = scalar_lea.sflag [#allocation6], %s243_s24  ;;  %s247_s7 = scalar_lea.vmem [#allocation5], %s552_s29 }
  0x51   : > { %793 = dma.done.wait (%p885_p6), %s244_s13, 256  }
  0x52   : > { %795 = vsyncadd (%p885_p6), %s244_s13, 4294967040  ;;  %vm303_vm0 = vcmask 261120   ;;  %v296_v0 = vld [vmem:[%s247_s7] sm:$0xff]  ;;  %v621_v1 = vld [vmem:[%s237_s8] ss:$0 sm:$0xff]  ;;  %s820_s11 = smov 96   ;;  %s394_s9 = scalar_lea.hbm %s1044_s3, %s867_s19 }
  0x53   : > { %554 = vmatpush.xpose.msk.msra.mxu0 %vm303_vm0, %v296_v0  ;;  %v295_v2 = vld [vmem:[%s237_s8] sm:$0x1]  ;;  %300 = vrot.lane.b32.xlu0 %v621_v1, %s820_s11  ;;  %vm329_vm1 = vcmask 57344   ;;  %s257_s25 = scalar_lea.vmem [#allocation7], %s552_s29  ;;  %vm355_vm6 = vcmask 64512   ;;  %s288_s10 = scalar_lea.vmem [#allocation8], %s974_s28 }
  0x54   : > { %v297_v12 = vld [vmem:[%s257_s25] sm:$0xff]  ;;  %s396_s14 = sshll.u32 %s288_s10, 4  ;;  %s398_s1 = sshll.u32 %s394_s9, 4  ;;  %s397_s14 = int_to_ptr.vmem [resolvable:$true] %s396_s14  ;;  %s399_s1 = int_to_ptr.hbm [resolvable:$true] %s398_s1 }
  0x55   : > { %374 = vmatpush.msra.mxu1 %v297_v12  ;;  %s382_s30 = scalar_lea.sflag [#allocation4], %s974_s28  ;;  %s730_s6 = sshra.s32 %s399_s1, 4  ;;  %s731_s6 = int_to_ptr.hbm [resolvable:$true] %s730_s6 }
  0x56   : > { %555 = vmatmul.msk.f32.vlgmr.msra.gmra.mxu0 %vm303_vm0, %v295_v2  ;;  %s732_s20 = scalar_lea.hbm %s731_s6, 1  ;;  %s736_s8 = scalar_lea.hbm %s1044_s3, 2 }
  0x57   : > { %p733_p6 = scmp.ne.s32.totalorder %s731_s6, %s732_s20  ;;  %p737_p2 = scmp.lt.s32.totalorder %s731_s6, %s1044_s3 }
  0x58   : > { %p738_p3 = scmp.lt.s32.totalorder %s736_s8, %s732_s20 }
  0x59   : > { %p734_p13 = pnand %p733_p6, %p892_p11 }
  0x5a   : > { %p739_p4 = por %p738_p3, %p737_p2 }
  0x5b   : > { %p735_p1 = pneg %p734_p13 }
  0x5d   : > { %p740_p7 = pnand %p739_p4, %p735_p1 }
  0xc5   : > { %v301_v3 = vpop.permute.xlu0 %300 }
  0xd3   : > { %v326_v4 = vpop.f32.mrf.mxu0 }
  0xd4   : > { %v327_v5 = vadd.f32 %v326_v4, %v301_v3 }
  0xd6   : > { %v330_v6 = vsel %vm329_vm1, %v327_v5, -inf }
  0xd7   : > { %331 = vmax.xlane.f32.xlu0 %v330_v6 }
 0x14a   : > { %v332_v7 = vpop.xlane.xlu0 %331 }
 0x14b   : > { %v333_v8 = vsub.f32 %v327_v5, %v332_v7 }
 0x14d   : > { %v334_v9 = vmul.f32 1.442695, %v333_v8 }
 0x14f   : > { %622 = vpow2.f32 %v334_v9 }
 0x155   : > { %v623_v10 = vpop.eup %622 }
 0x156   : > { %v336_v11 = vsel %vm329_vm1, %v623_v10, 0.0 }
 0x157   : > { %337 = vadd.xlane.f32.xlu1 %v336_v11 }
 0x1ca   : > { %v338_v13 = vpop.xlane.xlu1 %337 }
 0x1cb   : > { %624 = vrcp.f32 %v338_v13  ;;  %v350_v17 = vand.u32 2147483648, %v338_v13  ;;  %v348_v19 = vand.u32 2147483647, %v338_v13  ;;  %vm344_vm3 = vweird.f32 %v338_v13 }
 0x1cd   : > { %v351_v21 = vor.u32 1.1754944e-38, %v350_v17  ;;  %vm349_vm5 = vcmp.eq.f32.partialorder %v348_v19, 8.507059e+37 }
 0x1d1   : > { %v625_v14 = vpop.eup %624 }
 0x1d2   : > { %v340_v15 = vmul.f32 %v625_v14, %v338_v13  ;;  %vm345_vm2 = vweird.f32 %v625_v14 }
 0x1d3   : > { %vm346_vm4 = vmor %vm344_vm3, %vm345_vm2 }
 0x1d4   : > { %v341_v16 = vsub.f32 1.0, %v340_v15 }
 0x1d6   : > { %v342_v18 = vmul.f32 %v625_v14, %v341_v16 }
 0x1d8   : > { %v343_v20 = vadd.f32 %v625_v14, %v342_v18 }
 0x1da   : > { %v347_v22 = vsel %vm346_vm4, %v625_v14, %v343_v20 }
 0x1db   : > { %v352_v23 = vsel %vm349_vm5, %v351_v21, %v347_v22 }
 0x1dc   : > { %v353_v24 = vmul.f32 %v623_v10, %v352_v23 }
 0x1de   : > { %556 = vmatmul.msk.f32.vlgmr.msra.gmra.mxu1 %vm355_vm6, %v353_v24  ;;  %354 = vst.msk [vmem:[%s288_s10] sm:$0x1] %vm329_vm1, %v353_v24 }
 0x1df   : > { %743 = shalt.err (!%p740_p7)
}
 0x1e0   : > { %565 = dma.vmem_to_hbm [thread:$0]  (%p892_p11), %s397_s14, 16, %s399_s1, %s382_s30   ;;  %vm379_vm7 = vcmask 253952  }
 0x1e1   : > { %s407_s11 = scalar_lea.hbm %s1045_s4, %s867_s19  ;;  %s294_s25 = scalar_lea.vmem [#allocation9], %s974_s28 }
 0x1e2   : > { %s409_s12 = sshll.u32 %s294_s25, 4  ;;  %s411_s22 = sshll.u32 %s407_s11, 4  ;;  %s410_s12 = int_to_ptr.vmem [resolvable:$true] %s409_s12  ;;  %s412_s22 = int_to_ptr.hbm [resolvable:$true] %s411_s22 }
 0x1e3   : > { %s386_s9 = scalar_lea.sflag [#allocation10], %s974_s28  ;;  %s758_s10 = sshra.s32 %s412_s22, 4  ;;  %s759_s10 = int_to_ptr.hbm [resolvable:$true] %s758_s10 }
 0x1e4   : > { %s760_s6 = scalar_lea.hbm %s759_s10, 1  ;;  %s764_s19 = scalar_lea.hbm %s1045_s4, 2 }
 0x1e5   : > { %p761_p5 = scmp.ne.s32.totalorder %s759_s10, %s760_s6  ;;  %p765_p0 = scmp.lt.s32.totalorder %s759_s10, %s1045_s4 }
 0x1e6   : > { %p766_p6 = scmp.lt.s32.totalorder %s764_s19, %s760_s6 }
 0x1e7   : > { %p762_p8 = pnand %p761_p5, %p892_p11 }
 0x1e8   : > { %p767_p13 = por %p766_p6, %p765_p0 }
 0x1e9   : > { %p763_p10 = pneg %p762_p8 }
 0x1eb   : > { %p768_p1 = pnand %p767_p13, %p763_p10 }
 0x25b   : > { %v376_v25 = vpop.f32.mrf.mxu1 }
 0x25c   : > { %380 = vst.msk [vmem:[%s294_s25] sm:$0x1] %vm379_vm7, %v376_v25 }
 0x25d   : > { %771 = shalt.err (!%p768_p1)
}
 0x25e   : > { %566 = dma.vmem_to_hbm [thread:$0]  (%p892_p11), %s410_s12, 16, %s412_s22, %s386_s9  }
 0x25f PF: > { %s423_s28 = sand.u32 1, %s806_s15   ;;  %p580_p2 = pnand %p546_p9, %p896_p12 }
 0x260   : > { %s424_s23 = scalar_lea.sflag [#allocation4], %s423_s28 }
 0x261   : > { %p581_p3 = pneg %p580_p2 }
 0x263   : > { %797 = dma.done.wait (%p581_p3), %s424_s23, 16  }
 0x264   : > { %799 = vsyncadd (%p581_p3), %s424_s23, 4294967280  ;;  %s433_s5 = scalar_lea.sflag [#allocation10], %s423_s28 }
 0x265   : > { %801 = dma.done.wait (%p581_p3), %s433_s5, 16  }
 0x266   : > { %803 = vsyncadd (%p581_p3), %s433_s5, 4294967280  ;;  %s1056_s26 = sld [smem:[#allocation15_spill]]  ;;  %p24_p11 = scmp.ge.s32.totalorder %s871_s21, 4  }
 0x267   : > { %s1057_s15 = smov %s810_s16  ;;  %s1058_s16 = smov %s814_s17 }
 0x268   : > { %s1060_s18 = smov %s871_s21  ;;  %26 = sbr.rel (!%p24_p11) target bundleno = 11 (0xb), region = 118 }
 0x26c   : > { %s1059_s17 = smov %s1056_s26 }
 0x26d   :  { %438 = vsyncpa [#allocation3], 1 }
 0x26e   :  { %440 = vsyncpa [#allocation3 + $0x1], 1 }
 0x26f   :  { %441 = vsyncpa [#allocation6], 1 }
 0x270   :  { %443 = vsyncpa [#allocation6 + $0x1], 1 }
 0x271   :  { %444 = vsyncpa [#allocation4], 1 }
 0x272   :  { %446 = vsyncpa [#allocation4 + $0x1], 1 }
 0x273   :  { %447 = vsyncpa [#allocation10], 1 }
 0x274   :  { %449 = vsyncpa [#allocation10 + $0x1], 1 }

</bundles_post_ra>
